<compile_context>
chip_gen: v6e
topology: v6e:2x2x1
jax: 0.10.0
libtpu: 0.0.40
codegen_flags: <defaults>
</compile_context>

<pallas_src>
import jax
import jax.numpy as jnp
from jax.experimental import pallas as pl
from jax.experimental.pallas import tpu as pltpu

LANE = 128      # TPU lane width
SUBLANE = 8     # TPU sublane count (f32)


def _round_up(n, m):
    return ((n + m - 1) // m) * m


def _pad2(x, rows, cols):
    return jnp.pad(x, ((0, rows - x.shape[0]), (0, cols - x.shape[1])))


# ---------------------------------------------------------------------------
# Kernel
# ---------------------------------------------------------------------------
def dti_kernel(drug_ref, prot_ref,
               wd_ref, wp_ref, benc_ref,   # fused encoders (column-packed)
               w1_ref, b1_ref,             # pred_head Linear 1 (original w1)
               w2_ref, b2_ref,             # pred_head Linear 2 (lane-padded N)
               out_ref):
    # Fused encoders: wd_ref columns [0, e_drug) hold the drug encoder, zeros
    # elsewhere; wp_ref columns [e_drug, enc) hold the protein encoder, zeros
    # elsewhere.  The sum therefore lands h_drug and h_protein in disjoint
    # lanes of one (tb, enc) tile -> torch.cat is free.
    h = (jnp.dot(drug_ref[...], wd_ref[...], preferred_element_type=jnp.float32)
         + jnp.dot(prot_ref[...], wp_ref[...], preferred_element_type=jnp.float32)
         + benc_ref[...])
    h = jnp.maximum(h, 0.0)

    # pred_head Linear 1 + ReLU (Dropout is identity in eval mode).
    h1 = jnp.dot(h.astype(w1_ref.dtype), w1_ref[...],
                 preferred_element_type=jnp.float32) + b1_ref[...]
    h1 = jnp.maximum(h1, 0.0)

    # Final Linear; w2/b2 are lane-padded to 128 so the store is lane-dense.
    out_ref[...] = (jnp.dot(h1.astype(w2_ref.dtype), w2_ref[...],
                            preferred_element_type=jnp.float32)
                    + b2_ref[...]).astype(out_ref.dtype)


# ---------------------------------------------------------------------------
# One-time parameter packing (do NOT call per forward step)
# ---------------------------------------------------------------------------
def prepare_params(params, *, dtype=jnp.bfloat16):
    """Pad / pack / cast weights once; returns a dict consumed by dti_forward."""
    d_drug, e_drug = params["wd"].shape
    d_prot, e_prot = params["wp"].shape
    hidden = params["w1"].shape[1]
    pred_dim = params["w2"].shape[1]
    enc = e_drug + e_prot
    p_p = _round_up(pred_dim, LANE)          # lane-dense output width

    # Column-packed encoder weights (drug -> lanes [0, e_drug), protein -> rest).
    wd_pack = jnp.zeros((d_drug, enc), jnp.float32).at[:, :e_drug].set(params["wd"])
    wp_pack = jnp.zeros((d_prot, enc), jnp.float32).at[:, e_drug:].set(params["wp"])
    b_enc = jnp.concatenate([params["bd"], params["bp"]], axis=1)      # (1, enc)

    w2 = _pad2(params["w2"], hidden, p_p)
    b2 = _pad2(params["b2"], 1, p_p)

    return dict(
        wd=wd_pack.astype(dtype),
        wp=wp_pack.astype(dtype),
        b_enc=b_enc.astype(jnp.float32),
        w1=params["w1"].astype(dtype),
        b1=params["b1"].astype(jnp.float32),
        w2=w2.astype(dtype),
        b2=b2.astype(jnp.float32),
        pred_dim=pred_dim,
        act_dtype=dtype,
    )


# ---------------------------------------------------------------------------
# Forward wrapper
# ---------------------------------------------------------------------------
def dti_forward(drug, protein, packed, *, batch_tile=512):
    B, d_drug = drug.shape
    d_prot = protein.shape[1]
    enc = packed["wd"].shape[1]
    hidden = packed["w1"].shape[1]
    p_p = packed["w2"].shape[1]
    pred_dim = packed["pred_dim"]
    act_dtype = packed["act_dtype"]

    # Batch tiling: large tiles (multiple of 8), single grid step for tiny B.
    tb = max(SUBLANE, (min(batch_tile, _round_up(B, SUBLANE)) // SUBLANE) * SUBLANE)
    b_p = _round_up(B, tb)
    grid = (b_p // tb,)

    # Only batch rows are padded (and only if needed); feature dims stay real
    # (BlockSpec block == full last dim is legal, K-padding in the MXU is free).
    def prep(x):
        x = x.astype(act_dtype)
        if b_p != B:
            x = jnp.pad(x, ((0, b_p - B), (0, 0)))
        return x

    drug_p, prot_p = prep(drug), prep(protein)

    def act_spec(cols):
        return pl.BlockSpec((tb, cols), lambda i: (i, 0))

    def resident(rows, cols):   # same block every step -> stays in VMEM
        return pl.BlockSpec((rows, cols), lambda i: (0, 0))

    out = pl.pallas_call(
        dti_kernel,
        out_shape=jax.ShapeDtypeStruct((b_p, p_p), jnp.float32),
        grid=grid,
        in_specs=[
            act_spec(d_drug), act_spec(d_prot),
            resident(d_drug, enc), resident(d_prot, enc), resident(1, enc),
            resident(enc, hidden), resident(1, hidden),
            resident(hidden, p_p), resident(1, p_p),
        ],
        out_specs=pl.BlockSpec((tb, p_p), lambda i: (i, 0)),
        compiler_params=pltpu.CompilerParams(
            dimension_semantics=("parallel",)),   # shards batch across TCs on v7x
    )(drug_p, prot_p,
      packed["wd"], packed["wp"], packed["b_enc"],
      packed["w1"], packed["b1"],
      packed["w2"], packed["b2"])

    # drop batch/lane padding, then mirror MLP.forward's trailing .squeeze()
    return jnp.squeeze(out[:B, :pred_dim])


# ---------------------------------------------------------------------------
# Test scaffolding
# ---------------------------------------------------------------------------
def init_params(key, d_drug, d_prot, e_drug, e_prot, hidden, pred_dim):
    ks = jax.random.split(key, 8)
    scale = 0.1

    def lin(kw, kb, fan_in, fan_out):
        w = scale * jax.random.normal(kw, (fan_in, fan_out), jnp.float32)
        b = scale * jax.random.normal(kb, (1, fan_out), jnp.float32)
        return w, b

    wd, bd = lin(ks[0], ks[1], d_drug, e_drug)
    wp, bp = lin(ks[2], ks[3], d_prot, e_prot)
    w1, b1 = lin(ks[4], ks[5], e_drug + e_prot, hidden)
    w2, b2 = lin(ks[6], ks[7], hidden, pred_dim)
    return dict(wd=wd, bd=bd, wp=wp, bp=bp, w1=w1, b1=b1, w2=w2, b2=b2)


def dti_reference(drug, protein, p):
    h_d = jnp.maximum(drug @ p["wd"] + p["bd"], 0.0)
    h_p = jnp.maximum(protein @ p["wp"] + p["bp"], 0.0)
    h = jnp.concatenate([h_d, h_p], axis=1)
    h1 = jnp.maximum(h @ p["w1"] + p["b1"], 0.0)
    return jnp.squeeze(h1 @ p["w2"] + p["b2"])


if __name__ == "__main__":
    B = 16                     # batch (single grid step)
    D_DRUG, D_PROT = 32, 32    # raw drug / protein feature dims
    E_DRUG, E_PROT = 32, 32    # encoder output dims
    HIDDEN = 32                # pred_head hidden_size = [32]
    PRED_DIM = 1

    key = jax.random.PRNGKey(0)
    k_drug, k_prot, k_param = jax.random.split(key, 3)

    drug = jax.random.normal(k_drug, (B, D_DRUG), jnp.float32)
    protein = jax.random.normal(k_prot, (B, D_PROT), jnp.float32)
    params = init_params(k_param, D_DRUG, D_PROT, E_DRUG, E_PROT, HIDDEN, PRED_DIM)

    packed = prepare_params(params, dtype=jnp.bfloat16)   # one-time packing/cast
    out = dti_forward(drug, protein, packed)
    out = jax.block_until_ready(out)

    ref = dti_reference(drug, protein, params)             # f32 reference
    assert out.shape == ref.shape == (B,), (out.shape, ref.shape)
    # bf16 weights/activations (f32 accumulation) -> loosened tolerance.
    assert jnp.allclose(out, ref, atol=3e-2, rtol=3e-2), (
        float(jnp.max(jnp.abs(out - ref))))

    print("KERNEL_OK")
</pallas_src>

<mosaic_0001>
module attributes {stable_mosaic.version = 11 : i64} {
  func.func @dti_kernel(%arg0: i32, %arg1: memref<16x32xbf16, #tpu.memory_space<vmem>>, %arg2: memref<16x32xbf16, #tpu.memory_space<vmem>>, %arg3: memref<32x64xbf16, #tpu.memory_space<vmem>>, %arg4: memref<32x64xbf16, #tpu.memory_space<vmem>>, %arg5: memref<1x64xf32, #tpu.memory_space<vmem>>, %arg6: memref<64x32xbf16, #tpu.memory_space<vmem>>, %arg7: memref<1x32xf32, #tpu.memory_space<vmem>>, %arg8: memref<32x128xbf16, #tpu.memory_space<vmem>>, %arg9: memref<1x128xf32, #tpu.memory_space<vmem>>, %arg10: memref<16x128xf32, #tpu.memory_space<vmem>>) attributes {dimension_semantics = [#tpu.dimension_semantics<parallel>], iteration_bounds = array<i64: 1>, scalar_prefetch = 0 : i64, scratch_operands = 0 : i64, tpu.core_type = #tpu.core_type<tc>, window_params = [{transform_indices = @transform_0, window_bounds = array<i64: 16, 32>}, {transform_indices = @transform_1, window_bounds = array<i64: 16, 32>}, {pipeline_mode = #tpu.pipeline_mode<synchronous>, transform_indices = @transform_2, window_bounds = array<i64: 32, 64>}, {pipeline_mode = #tpu.pipeline_mode<synchronous>, transform_indices = @transform_3, window_bounds = array<i64: 32, 64>}, {pipeline_mode = #tpu.pipeline_mode<synchronous>, transform_indices = @transform_4, window_bounds = array<i64: 1, 64>}, {pipeline_mode = #tpu.pipeline_mode<synchronous>, transform_indices = @transform_5, window_bounds = array<i64: 64, 32>}, {pipeline_mode = #tpu.pipeline_mode<synchronous>, transform_indices = @transform_6, window_bounds = array<i64: 1, 32>}, {pipeline_mode = #tpu.pipeline_mode<synchronous>, transform_indices = @transform_7, window_bounds = array<i64: 32, 128>}, {pipeline_mode = #tpu.pipeline_mode<synchronous>, transform_indices = @transform_8, window_bounds = array<i64: 1, 128>}, {transform_indices = @transform_9, window_bounds = array<i64: 16, 128>}]} {
    %c0 = arith.constant 0 : index
    %c0_0 = arith.constant 0 : index
    %0 = vector.load %arg1[%c0, %c0_0] : memref<16x32xbf16, #tpu.memory_space<vmem>>, vector<16x32xbf16>
    %c0_1 = arith.constant 0 : index
    %c0_2 = arith.constant 0 : index
    %1 = vector.load %arg3[%c0_1, %c0_2] : memref<32x64xbf16, #tpu.memory_space<vmem>>, vector<32x64xbf16>
    %cst = arith.constant dense<0.000000e+00> : vector<16x64xf32>
    %2 = tpu.matmul %0, %1, %cst {dimension_numbers = #tpu.dot_dimension_numbers<[1], [0], [0], [1], [0, 0, 1, 1], [], []>} : vector<16x32xbf16>, vector<32x64xbf16>, vector<16x64xf32> -> vector<16x64xf32>
    %c0_3 = arith.constant 0 : index
    %c0_4 = arith.constant 0 : index
    %3 = vector.load %arg2[%c0_3, %c0_4] : memref<16x32xbf16, #tpu.memory_space<vmem>>, vector<16x32xbf16>
    %c0_5 = arith.constant 0 : index
    %c0_6 = arith.constant 0 : index
    %4 = vector.load %arg4[%c0_5, %c0_6] : memref<32x64xbf16, #tpu.memory_space<vmem>>, vector<32x64xbf16>
    %cst_7 = arith.constant dense<0.000000e+00> : vector<16x64xf32>
    %5 = tpu.matmul %3, %4, %cst_7 {dimension_numbers = #tpu.dot_dimension_numbers<[1], [0], [0], [1], [0, 0, 1, 1], [], []>} : vector<16x32xbf16>, vector<32x64xbf16>, vector<16x64xf32> -> vector<16x64xf32>
    %6 = arith.addf %2, %5 : vector<16x64xf32>
    %c0_8 = arith.constant 0 : index
    %c0_9 = arith.constant 0 : index
    %7 = vector.load %arg5[%c0_8, %c0_9] : memref<1x64xf32, #tpu.memory_space<vmem>>, vector<1x64xf32>
    %8 = vector.broadcast %7 : vector<1x64xf32> to vector<16x64xf32>
    %9 = arith.addf %6, %8 : vector<16x64xf32>
    %cst_10 = arith.constant 0.000000e+00 : f32
    %10 = vector.broadcast %cst_10 : f32 to vector<16x64xf32>
    %11 = arith.maximumf %9, %10 : vector<16x64xf32>
    %12 = arith.truncf %11 : vector<16x64xf32> to vector<16x64xbf16>
    %c0_11 = arith.constant 0 : index
    %c0_12 = arith.constant 0 : index
    %13 = vector.load %arg6[%c0_11, %c0_12] : memref<64x32xbf16, #tpu.memory_space<vmem>>, vector<64x32xbf16>
    %cst_13 = arith.constant dense<0.000000e+00> : vector<16x32xf32>
    %14 = tpu.matmul %12, %13, %cst_13 {dimension_numbers = #tpu.dot_dimension_numbers<[1], [0], [0], [1], [0, 0, 1, 1], [], []>} : vector<16x64xbf16>, vector<64x32xbf16>, vector<16x32xf32> -> vector<16x32xf32>
    %c0_14 = arith.constant 0 : index
    %c0_15 = arith.constant 0 : index
    %15 = vector.load %arg7[%c0_14, %c0_15] : memref<1x32xf32, #tpu.memory_space<vmem>>, vector<1x32xf32>
    %16 = vector.broadcast %15 : vector<1x32xf32> to vector<16x32xf32>
    %17 = arith.addf %14, %16 : vector<16x32xf32>
    %cst_16 = arith.constant 0.000000e+00 : f32
    %18 = vector.broadcast %cst_16 : f32 to vector<16x32xf32>
    %19 = arith.maximumf %17, %18 : vector<16x32xf32>
    %20 = arith.truncf %19 : vector<16x32xf32> to vector<16x32xbf16>
    %c0_17 = arith.constant 0 : index
    %c0_18 = arith.constant 0 : index
    %21 = vector.load %arg8[%c0_17, %c0_18] : memref<32x128xbf16, #tpu.memory_space<vmem>>, vector<32x128xbf16>
    %cst_19 = arith.constant dense<0.000000e+00> : vector<16x128xf32>
    %22 = tpu.matmul %20, %21, %cst_19 {dimension_numbers = #tpu.dot_dimension_numbers<[1], [0], [0], [1], [0, 0, 1, 1], [], []>} : vector<16x32xbf16>, vector<32x128xbf16>, vector<16x128xf32> -> vector<16x128xf32>
    %c0_20 = arith.constant 0 : index
    %c0_21 = arith.constant 0 : index
    %23 = vector.load %arg9[%c0_20, %c0_21] : memref<1x128xf32, #tpu.memory_space<vmem>>, vector<1x128xf32>
    %24 = vector.broadcast %23 : vector<1x128xf32> to vector<16x128xf32>
    %25 = arith.addf %22, %24 : vector<16x128xf32>
    %c0_22 = arith.constant 0 : index
    %c0_23 = arith.constant 0 : index
    %26 = vector.load %arg10[%c0_22, %c0_23] : memref<16x128xf32, #tpu.memory_space<vmem>>, vector<16x128xf32>
    tpu.vector_store %arg10[%c0_22, %c0_23], %25 {strides = array<i32>} : memref<16x128xf32, #tpu.memory_space<vmem>>, vector<16x128xf32>,
    return
  }
  func.func @transform_0(%arg0: i32) -> (i32, i32) {
    %c0_i32 = arith.constant 0 : i32
    %c0_i32_0 = arith.constant 0 : i32
    return %arg0, %c0_i32 : i32, i32
  }
  func.func @transform_1(%arg0: i32) -> (i32, i32) {
    %c0_i32 = arith.constant 0 : i32
    %c0_i32_0 = arith.constant 0 : i32
    return %arg0, %c0_i32 : i32, i32
  }
  func.func @transform_2(%arg0: i32) -> (i32, i32) {
    %c0_i32 = arith.constant 0 : i32
    %c0_i32_0 = arith.constant 0 : i32
    %c0_i32_1 = arith.constant 0 : i32
    return %c0_i32, %c0_i32_0 : i32, i32
  }
  func.func @transform_3(%arg0: i32) -> (i32, i32) {
    %c0_i32 = arith.constant 0 : i32
    %c0_i32_0 = arith.constant 0 : i32
    %c0_i32_1 = arith.constant 0 : i32
    return %c0_i32, %c0_i32_0 : i32, i32
  }
  func.func @transform_4(%arg0: i32) -> (i32, i32) {
    %c0_i32 = arith.constant 0 : i32
    %c0_i32_0 = arith.constant 0 : i32
    %c0_i32_1 = arith.constant 0 : i32
    return %c0_i32, %c0_i32_0 : i32, i32
  }
  func.func @transform_5(%arg0: i32) -> (i32, i32) {
    %c0_i32 = arith.constant 0 : i32
    %c0_i32_0 = arith.constant 0 : i32
    %c0_i32_1 = arith.constant 0 : i32
    return %c0_i32, %c0_i32_0 : i32, i32
  }
  func.func @transform_6(%arg0: i32) -> (i32, i32) {
    %c0_i32 = arith.constant 0 : i32
    %c0_i32_0 = arith.constant 0 : i32
    %c0_i32_1 = arith.constant 0 : i32
    return %c0_i32, %c0_i32_0 : i32, i32
  }
  func.func @transform_7(%arg0: i32) -> (i32, i32) {
    %c0_i32 = arith.constant 0 : i32
    %c0_i32_0 = arith.constant 0 : i32
    %c0_i32_1 = arith.constant 0 : i32
    return %c0_i32, %c0_i32_0 : i32, i32
  }
  func.func @transform_8(%arg0: i32) -> (i32, i32) {
    %c0_i32 = arith.constant 0 : i32
    %c0_i32_0 = arith.constant 0 : i32
    %c0_i32_1 = arith.constant 0 : i32
    return %c0_i32, %c0_i32_0 : i32, i32
  }
  func.func @transform_9(%arg0: i32) -> (i32, i32) {
    %c0_i32 = arith.constant 0 : i32
    %c0_i32_0 = arith.constant 0 : i32
    return %arg0, %c0_i32 : i32, i32
  }
}

</mosaic_0001>

<bundles_post_ra>
// kernel: tpu_custom_call.1
= control target key start
LH: loop header
LB: loop body
LE: loop exit
PB: predicated region body
PF: predicated region fallthrough
CT: control target
= control target key end

     0   :  { %14 = vsyncpa [#allocation3], 0  ;;  %s653_s0 = inlined_call_operand.hbm [shape: bf16[16,32], index: 0, kind: input, shape index: {}]   ;;  %s654_s1 = inlined_call_operand.hbm [shape: bf16[16,32], index: 1, kind: input, shape index: {}]   ;;  %s655_s2 = inlined_call_operand.vmem [shape: bf16[32,64], index: 2, kind: input, shape index: {}]   ;;  %s656_s3 = inlined_call_operand.vmem [shape: bf16[32,64], index: 3, kind: input, shape index: {}]   ;;  %s657_s4 = inlined_call_operand.vmem [shape: f32[1,64], index: 4, kind: input, shape index: {}]   ;;  %s658_s5 = inlined_call_operand.vmem [shape: bf16[64,32], index: 5, kind: input, shape index: {}]   ;;  %s659_s6 = inlined_call_operand.vmem [shape: f32[1,32], index: 6, kind: input, shape index: {}]   ;;  %s660_s7 = inlined_call_operand.vmem [shape: bf16[32,128], index: 7, kind: input, shape index: {}]   ;;  %s661_s8 = inlined_call_operand.vmem [shape: f32[1,128], index: 8, kind: input, shape index: {}]   ;;  %s662_s9 = inlined_call_operand.hbm [shape: f32[16,128], index: 9, kind: output, shape index: {}]  }
   0x1   :  { %15 = vsyncpa [#allocation6], 0 }
   0x2   :  { %16 = vsyncpa [#allocation4], 0  ;;  %s539_s30 = smov [#allocation2]  }
   0x3   :  { %s22_s10 = sshll.u32 %s539_s30, 4  ;;  %s23_s10 = int_to_ptr.vmem [resolvable:$true] %s22_s10 }
   0x4   :  { %s481_s11 = scalar_lea.vmem %s23_s10, 128  ;;  %p486_p1 = scmp.lt.s32.totalorder %s23_s10, %s23_s10 }
   0x5   :  { %p482_p0 = scmp.ne.s32.totalorder %s23_s10, %s481_s11  ;;  %p487_p2 = scmp.lt.s32.totalorder %s481_s11, %s481_s11 }
   0x7   :  { %p488_p3 = por %p487_p2, %p486_p1 }
   0x9   :  { %p489_p4 = pnand %p488_p3, %p482_p0 }
   0xb   :  { %492 = shalt.err (!%p489_p4)
}
   0xc   :  { %s540_s12 = smov 64   ;;  %s541_s13 = smov 4  }
   0xd   :  { %28 = dma.hbm_to_vmem [thread:$0]  %s653_s0, 128, %s23_s10, [#allocation3], %s540_s12, %s540_s12, %s541_s13  }
   0xe   :  { %s542_s16 = smov [#allocation5]  }
   0xf   :  { %s34_s17 = sshll.u32 %s542_s16, 4  ;;  %s35_s17 = int_to_ptr.vmem [resolvable:$true] %s34_s17 }
  0x10   :  { %s501_s18 = scalar_lea.vmem %s35_s17, 128  ;;  %p506_p6 = scmp.lt.s32.totalorder %s35_s17, %s35_s17 }
  0x11   :  { %p502_p5 = scmp.ne.s32.totalorder %s35_s17, %s501_s18  ;;  %p507_p7 = scmp.lt.s32.totalorder %s501_s18, %s501_s18 }
  0x13   :  { %p508_p8 = por %p507_p7, %p506_p6 }
  0x15   :  { %p509_p9 = pnand %p508_p8, %p502_p5 }
  0x17   :  { %512 = shalt.err (!%p509_p9)
}
  0x18   :  { %40 = dma.hbm_to_vmem [thread:$0]  %s654_s1, 128, %s35_s17, [#allocation6], %s540_s12, %s540_s12, %s541_s13  }
  0x19   :  { %533 = dma.done.wait [#allocation3], 128  }
  0x1a   :  { %534 = vsyncadd [#allocation3], 4294967168 }
  0x1b   :  { %535 = dma.done.wait [#allocation6], 128  }
  0x1c   :  { %536 = vsyncadd [#allocation6], 4294967168  ;;  %v543_v0 = vmov 0.0   ;;  %vm544_vm0 = vmmov 0   ;;  %v461_v1 = vld [vmem:[%s656_s3 + $0x8] sm:$0xff]   ;;  %v463_v3 = vld [vmem:[%s656_s3] sm:$0xff]  }
  0x1d   :  { %416 = vmatprep.subr.bf16.mxu0 %v543_v0  ;;  %424 = vmatprep.subr.bf16.mxu1 %v543_v0  ;;  %v462_v2 = vld [vmem:[%s655_s2 + $0x8] sm:$0xff]   ;;  %v464_v4 = vld [vmem:[%s655_s2] sm:$0xff]   ;;  %vm91_vm1 = vcmask 261120   ;;  %v467_v7 = vld [vmem:[%s658_s5 + $0x18] sm:$0xff]   ;;  %vm248_vm2 = vcmask 523264  }
  0x1e   :  { %420 = vmatprep.mubr.msk.bf16.mxu0 %vm544_vm0, %v543_v0  ;;  %428 = vmatprep.mubr.msk.bf16.mxu1 %vm544_vm0, %v543_v0  ;;  %v465_v5 = vld [vmem:[#allocation5] sm:$0xff]   ;;  %v466_v6 = vld [vmem:[#allocation2] sm:$0xff]   ;;  %v468_v8 = vld [vmem:[%s658_s5 + $0x10] sm:$0xff]  }
  0x1f   :  { %417 = vmatpush3.bf16.msra.mxu0 %v461_v1  ;;  %425 = vmatpush3.bf16.msra.mxu1 %v462_v2  ;;  %v469_v9 = vld [vmem:[%s658_s5 + $0x8] sm:$0xff]   ;;  %v470_v10 = vld [vmem:[%s658_s5] sm:$0xff]  }
  0x20   :  { %418 = vmatprep.subr.bf16.mxu0 %v543_v0  ;;  %426 = vmatprep.subr.bf16.mxu1 %v543_v0  ;;  %v391_v15 = vld [vmem:[%s657_s4] ss:$0 sm:$0xff]  ;;  %v471_v27 = vld [vmem:[%s660_s7 + $0x8] sm:$0xff]  }
  0x21   :  { %v472_v28 = vld [vmem:[%s660_s7] sm:$0xff]   ;;  %s545_s7 = smov [#allocation7]  }
  0x22   :  { %v392_v29 = vld [vmem:[%s659_s6] ss:$0 sm:$0xff]  ;;  %s370_s20 = sshll.u32 %s545_s7, 4  ;;  %s371_s20 = int_to_ptr.vmem [resolvable:$true] %s370_s20 }
  0x23   :  { %419 = vmatpush3.bf16.msra.mxu0 %v463_v3  ;;  %427 = vmatpush3.bf16.msra.mxu1 %v464_v4  ;;  %v398_v39 = vld [vmem:[%s661_s8] ss:$0 sm:$0xff]  ;;  %s513_s6 = scalar_lea.vmem %s371_s20, 256  ;;  %p518_p11 = scmp.lt.s32.totalorder %s371_s20, %s371_s20 }
  0x24   :  { %432 = vmatprep.subr.bf16.mxu0 %v543_v0  ;;  %444 = vmatprep.subr.bf16.mxu1 %v543_v0  ;;  %p514_p10 = scmp.ne.s32.totalorder %s371_s20, %s513_s6  ;;  %p519_p12 = scmp.lt.s32.totalorder %s513_s6, %s513_s6 }
  0x26   :  { %421 = vmatmul.mubr.msk.bf16.vlgmr.msra.gmra.mxu0 %vm91_vm1, %v465_v5  ;;  %429 = vmatmul.mubr.msk.bf16.vlgmr.msra.gmra.mxu1 %vm91_vm1, %v466_v6  ;;  %p520_p13 = por %p519_p12, %p518_p11 }
  0x27   :  { %433 = vmatpush3.bf16.msra.mxu0 %v467_v7  ;;  %440 = vmatprep.mubr.msk.bf16.mxu0 %vm544_vm0, %v543_v0 }
  0x28   :  { %434 = vmatprep.subr.bf16.mxu0 %v543_v0  ;;  %448 = vmatprep.mubr.msk.bf16.mxu1 %vm544_vm0, %v543_v0  ;;  %p521_p0 = pnand %p520_p13, %p514_p10 }
  0x29   :  { %445 = vmatpush3.bf16.msra.mxu1 %v471_v27 }
  0x2a   :  { %446 = vmatprep.subr.bf16.mxu1 %v543_v0 }
  0x2b   :  { %435 = vmatpush3.bf16.msra.mxu0 %v468_v8 }
  0x2c   :  { %436 = vmatprep.subr.bf16.mxu0 %v543_v0 }
  0x2d   :  { %447 = vmatpush3.bf16.msra.mxu1 %v472_v28 }
  0x2f   :  { %437 = vmatpush3.bf16.msra.mxu0 %v469_v9 }
  0x30   :  { %438 = vmatprep.subr.bf16.mxu0 %v543_v0 }
  0x33   :  { %439 = vmatpush3.bf16.msra.mxu0 %v470_v10 }
  0xe6   :  { %v129_v11 = vpop.f32.mrf.mxu0  ;;  %v190_v12 = vpop.f32.mrf.mxu1 }
  0xe7   :  { %v191_v13 = vadd.f32 %v190_v12, %v129_v11 }
  0xe8   :  { %v422_v14 = vpop.f32.mrf.mxu0  ;;  %v430_v16 = vpop.f32.mrf.mxu1 }
  0xe9   :  { %v204_v19 = vadd.f32 %v391_v15, %v191_v13 }
  0xea   :  { %v132_v17 = vpop.f32.mrf.mxu0  ;;  %v193_v18 = vpop.f32.mrf.mxu1 }
  0xeb   :  { %v194_v20 = vadd.f32 %v193_v18, %v132_v17  ;;  %v206_v24 = vmax.f32 %v204_v19, 0.0 }
  0xec   :  { %v423_v21 = vpop.f32.mrf.mxu0  ;;  %v431_v22 = vpop.f32.mrf.mxu1 }
  0xed   :  { %v205_v23 = vadd.f32 %v391_v15, %v194_v20 }
  0xef   :  { %v207_v25 = vmax.f32 %v205_v23, 0.0 }
  0xf1   :  { %v208_v26 = vpack.c.bf16 %v207_v25, %v206_v24 }
  0xf3   :  { %441 = vmatmul.mubr.msk.bf16.vlgmr.msra.gmra.mxu0 %vm248_vm2, %v208_v26 }
 0x1b3   :  { %v286_v30 = vpop.f32.mrf.mxu0 }
 0x1b4   :  { %v287_v32 = vadd.f32 %v392_v29, %v286_v30 }
 0x1b5   :  { %v442_v31 = vpop.f32.mrf.mxu0 }
 0x1b6   :  { %v293_v36 = vmax.f32 %v287_v32, 0.0 }
 0x1b7   :  { %v289_v33 = vpop.f32.mrf.mxu0 }
 0x1b8   :  { %v290_v34 = vadd.f32 %v392_v29, %v289_v33 }
 0x1b9   :  { %v443_v35 = vpop.f32.mrf.mxu0 }
 0x1ba   :  { %v294_v37 = vmax.f32 %v290_v34, 0.0 }
 0x1bc   :  { %v295_v38 = vpack.c.bf16 %v294_v37, %v293_v36 }
 0x1be   :  { %449 = vmatmul.mubr.msk.bf16.vlgmr.msra.gmra.mxu1 %vm91_vm1, %v295_v38 }
 0x27e   :  { %v356_v40 = vpop.f32.mrf.mxu1 }
 0x27f   :  { %v357_v41 = vadd.f32 %v398_v39, %v356_v40 }
 0x280   :  { %v450_v42 = vpop.f32.mrf.mxu1 }
 0x281   :  { %363 = vst [vmem:[#allocation7] sm:$0xff] %v357_v41 }
 0x282   :  { %v359_v43 = vpop.f32.mrf.mxu1 }
 0x283   :  { %v360_v44 = vadd.f32 %v398_v39, %v359_v43 }
 0x284   :  { %v451_v45 = vpop.f32.mrf.mxu1 }
 0x285   :  { %364 = vst [vmem:[#allocation7 + $0x8] sm:$0xff] %v360_v44 }
 0x286   :  { %524 = shalt.err (!%p521_p0)
}
 0x287   :  { %s546_s0 = smov 128   ;;  %s547_s8 = smov 8  }
 0x288   :  { %376 = dma.vmem_to_hbm [thread:$0]  %s371_s20, 256, %s662_s9, [#allocation4], %s546_s0, %s546_s0, %s547_s8  }
 0x289   :  { %537 = dma.done.wait [#allocation4], 256  }
 0x28a   :  { %538 = vsyncadd [#allocation4], 4294967040 }
 0x28b   :  { %380 = vsyncpa [#allocation3], 1 }
 0x28c   :  { %381 = vsyncpa [#allocation6], 1 }
 0x28d   :  { %382 = vsyncpa [#allocation4], 1 }

</bundles_post_ra>
